<compile_context>
chip_gen: v7x
topology: tpu7x:2x2x1
jax: 0.10.0
libtpu: 0.0.40
codegen_flags: <defaults>
</compile_context>

<pallas_src>
import functools

import jax
import jax.numpy as jnp
from jax.experimental import pallas as pl
from jax.experimental.pallas import tpu as pltpu


def _hash_u32(x):
    """32-bit integer finalizer (Wang/murmur style) — portable counter-based PRNG."""
    x = x ^ (x >> jnp.uint32(16))
    x = x * jnp.uint32(0x7FEB352D)
    x = x ^ (x >> jnp.uint32(15))
    x = x * jnp.uint32(0x846CA68B)
    x = x ^ (x >> jnp.uint32(16))
    return x


def _sublayer_connection_kernel(seed_ref, x_ref, gamma_ref, beta_ref,
                                w_ref, b_ref, o_ref, *,
                                eps, p_dropout, training, block_rows, d_model):
    # x_ref: (bm, D) tile of rows; gamma/beta/b: (1, D); w: (D, D) in matmul dtype (bf16).
    x = x_ref[...].astype(jnp.float32)
    d = d_model

    # ---- LayerNorm (PyTorch reference semantics: unbiased std, eps added to std) ----
    mean = jnp.mean(x, axis=-1, keepdims=True)
    cx = x - mean
    var = jnp.sum(cx * cx, axis=-1, keepdims=True) * (1.0 / float(max(d - 1, 1)))
    std = jnp.sqrt(var)
    # TODO(synk): on real HW pl.reciprocal(std + eps, approx=True) moves this to the EUP;
    # plain divide kept for interpret-mode portability.
    inv = 1.0 / (std + eps)
    y = gamma_ref[...] * (cx * inv) + beta_ref[...]

    # ---- sublayer: Linear(D, D) on the MXU; operands in weight dtype, f32 accumulate ----
    z = jnp.dot(y.astype(w_ref.dtype), w_ref[...],
                preferred_element_type=jnp.float32) + b_ref[...].astype(jnp.float32)

    # ---- dropout (inverted scaling), counter-based hash PRNG, integer-domain keep test ----
    # TODO(synk): cannot bit-match torch's RNG stream; mask is a pure function of
    # (seed, global element index) so it is invariant to the tiling choice.
    if training and p_dropout > 0.0:
        bm = x.shape[0]
        rows = (jax.lax.broadcasted_iota(jnp.int32, (bm, d), 0)
                + pl.program_id(0) * block_rows)
        cols = jax.lax.broadcasted_iota(jnp.int32, (bm, d), 1)
        idx = (rows * d + cols).astype(jnp.uint32)
        seed_u = seed_ref[0].astype(jnp.uint32) * jnp.uint32(0x9E3779B9)
        bits24 = _hash_u32(idx ^ seed_u) >> jnp.uint32(8)          # 24 random bits
        thresh = jnp.uint32(int(round(p_dropout * (1 << 24))))
        keep = bits24 >= thresh                                     # P(keep) ~= 1 - p
        z = jnp.where(keep, z * (1.0 / (1.0 - p_dropout)), 0.0)

    # ---- residual add ----
    o_ref[...] = (x + z).astype(o_ref.dtype)


def sublayer_connection(x, gamma, beta, w, b, *,
                        p_dropout=0.1, eps=1e-6, training=True, seed=0,
                        block_rows=256, matmul_dtype=jnp.bfloat16,
                        vmem_limit_bytes=64 * 1024 * 1024):
    """x: (B, S, D). Returns x + dropout(Linear(LayerNorm(x)))."""
    B, S, D = x.shape
    n_rows = B * S
    x2 = x.reshape(n_rows, D)

    # Large row tile (amortizes ~0.35us/grid-step overhead, feeds the MXU), clamped to the
    # problem size; multiple of 8 for f32 sublane tiling. Pad rows so the grid is exact.
    bm = min(block_rows, n_rows)
    bm = max(8, (bm // 8) * 8)
    n_pad = pl.cdiv(n_rows, bm) * bm
    if n_pad != n_rows:
        x2 = jnp.pad(x2, ((0, n_pad - n_rows), (0, 0)))

    seed_arr = jnp.asarray([seed], dtype=jnp.int32)
    w_mx = w.astype(matmul_dtype)   # bf16 weight: MXU-native, half VMEM/HBM footprint
    # TODO(synk): for very large D (>= 2048) add an N-tiling grid axis so the resident
    # weight tile is (D, tn) instead of (D, D) to fit v7x's 64 MiB VMEM.

    kernel = functools.partial(
        _sublayer_connection_kernel,
        eps=float(eps), p_dropout=float(p_dropout), training=bool(training),
        block_rows=bm, d_model=D)

    out = pl.pallas_call(
        kernel,
        out_shape=jax.ShapeDtypeStruct((n_pad, D), x.dtype),
        grid=(n_pad // bm,),
        in_specs=[
            pl.BlockSpec(memory_space=pltpu.MemorySpace.SMEM),   # seed (scalar)
            pl.BlockSpec((bm, D), lambda i: (i, 0)),             # x rows
            pl.BlockSpec((1, D), lambda i: (0, 0)),              # LN scale
            pl.BlockSpec((1, D), lambda i: (0, 0)),              # LN bias
            pl.BlockSpec((D, D), lambda i: (0, 0)),              # Linear weight (bf16)
            pl.BlockSpec((1, D), lambda i: (0, 0)),              # Linear bias
        ],
        out_specs=pl.BlockSpec((bm, D), lambda i: (i, 0)),
        compiler_params=pltpu.CompilerParams(
            dimension_semantics=("parallel",),      # row tiles independent -> both TCs on v7x
            vmem_limit_bytes=vmem_limit_bytes),
    )(seed_arr, x2, gamma.reshape(1, D), beta.reshape(1, D), w_mx, b.reshape(1, D))

    if n_pad != n_rows:
        out = out[:n_rows]
    return out.reshape(B, S, D)


def _reference_eval(x, gamma, beta, w, b, eps):
    """Pure-JAX reference of the forward pass with dropout disabled (eval mode)."""
    mean = jnp.mean(x, axis=-1, keepdims=True)
    var = jnp.sum((x - mean) ** 2, axis=-1, keepdims=True) / (x.shape[-1] - 1)
    std = jnp.sqrt(var)
    y = gamma * (x - mean) / (std + eps) + beta
    return x + (y @ w + b)


if __name__ == "__main__":
    key = jax.random.PRNGKey(0)
    B, S, D = 2, 8, 32
    kx, kw = jax.random.split(key)

    x = jax.random.normal(kx, (B, S, D), dtype=jnp.float32)

    # LayerNorm params exactly as in __init__: ones / zeros.
    gamma = jnp.ones((D,), jnp.float32)
    beta = jnp.zeros((D,), jnp.float32)

    # Deterministic sublayer = Linear(D, D).
    w = jax.random.normal(kw, (D, D), dtype=jnp.float32) / jnp.sqrt(float(D))
    b = jnp.zeros((D,), jnp.float32)

    # 1) Numerics check vs. pure-JAX reference (dropout off, exact f32 matmul path).
    out_eval = sublayer_connection(x, gamma, beta, w, b,
                                   p_dropout=0.1, eps=1e-6, training=False,
                                   matmul_dtype=jnp.float32)
    ref = _reference_eval(x, gamma, beta, w, b, 1e-6)
    jax.block_until_ready(out_eval)
    assert jnp.allclose(out_eval, ref, atol=1e-4, rtol=1e-4)

    # 2) Default fast path: bf16 MXU operands + dropout enabled.
    out = sublayer_connection(x, gamma, beta, w, b,
                              p_dropout=0.1, eps=1e-6, training=True, seed=0)
    jax.block_until_ready(out)
    assert out.shape == (B, S, D) and out.dtype == jnp.float32
    assert bool(jnp.all(jnp.isfinite(out)))
    print("KERNEL_OK")
</pallas_src>

<mosaic_0001>
module attributes {stable_mosaic.version = 11 : i64} {
  func.func @_sublayer_connection_kernel(%arg0: i32, %arg1: memref<1xi32, #tpu.memory_space<smem>>, %arg2: memref<16x32xf32, #tpu.memory_space<vmem>>, %arg3: memref<1x32xf32, #tpu.memory_space<vmem>>, %arg4: memref<1x32xf32, #tpu.memory_space<vmem>>, %arg5: memref<32x32xf32, #tpu.memory_space<vmem>>, %arg6: memref<1x32xf32, #tpu.memory_space<vmem>>, %arg7: memref<16x32xf32, #tpu.memory_space<vmem>>) attributes {dimension_semantics = [#tpu.dimension_semantics<parallel>], iteration_bounds = array<i64: 1>, scalar_prefetch = 0 : i64, scratch_operands = 0 : i64, tpu.core_type = #tpu.core_type<tc>, window_params = [{transform_indices = @transform_0, window_bounds = array<i64: 1>}, {transform_indices = @transform_1, window_bounds = array<i64: 16, 32>}, {pipeline_mode = #tpu.pipeline_mode<synchronous>, transform_indices = @transform_2, window_bounds = array<i64: 1, 32>}, {pipeline_mode = #tpu.pipeline_mode<synchronous>, transform_indices = @transform_3, window_bounds = array<i64: 1, 32>}, {pipeline_mode = #tpu.pipeline_mode<synchronous>, transform_indices = @transform_4, window_bounds = array<i64: 32, 32>}, {pipeline_mode = #tpu.pipeline_mode<synchronous>, transform_indices = @transform_5, window_bounds = array<i64: 1, 32>}, {transform_indices = @transform_6, window_bounds = array<i64: 16, 32>}]} {
    %c0 = arith.constant 0 : index
    %c0_0 = arith.constant 0 : index
    %0 = vector.load %arg2[%c0, %c0_0] : memref<16x32xf32, #tpu.memory_space<vmem>>, vector<16x32xf32>
    %cst = arith.constant dense<0.000000e+00> : vector<16xf32>
    %1 = vector.multi_reduction <add>, %0, %cst [1] : vector<16x32xf32> to vector<16xf32>
    %2 = vector.shape_cast %1 : vector<16xf32> to vector<16x1xf32>
    %cst_1 = arith.constant 3.200000e+01 : f32
    %3 = vector.broadcast %cst_1 : f32 to vector<16x1xf32>
    %4 = arith.divf %2, %3 : vector<16x1xf32>
    %5 = vector.broadcast %4 : vector<16x1xf32> to vector<16x32xf32>
    %6 = arith.subf %0, %5 : vector<16x32xf32>
    %7 = arith.mulf %6, %6 : vector<16x32xf32>
    %cst_2 = arith.constant dense<0.000000e+00> : vector<16xf32>
    %8 = vector.multi_reduction <add>, %7, %cst_2 [1] : vector<16x32xf32> to vector<16xf32>
    %9 = vector.shape_cast %8 : vector<16xf32> to vector<16x1xf32>
    %cst_3 = arith.constant 0.0322580636 : f32
    %10 = vector.broadcast %cst_3 : f32 to vector<16x1xf32>
    %11 = arith.mulf %9, %10 : vector<16x1xf32>
    %12 = math.sqrt %11 : vector<16x1xf32>
    %cst_4 = arith.constant 9.99999997E-7 : f32
    %13 = vector.broadcast %cst_4 : f32 to vector<16x1xf32>
    %14 = arith.addf %12, %13 : vector<16x1xf32>
    %cst_5 = arith.constant 1.000000e+00 : f32
    %15 = vector.broadcast %cst_5 : f32 to vector<16x1xf32>
    %16 = arith.divf %15, %14 : vector<16x1xf32>
    %c0_6 = arith.constant 0 : index
    %c0_7 = arith.constant 0 : index
    %17 = vector.load %arg3[%c0_6, %c0_7] : memref<1x32xf32, #tpu.memory_space<vmem>>, vector<1x32xf32>
    %18 = vector.broadcast %16 : vector<16x1xf32> to vector<16x32xf32>
    %19 = arith.mulf %6, %18 : vector<16x32xf32>
    %20 = vector.broadcast %17 : vector<1x32xf32> to vector<16x32xf32>
    %21 = arith.mulf %20, %19 : vector<16x32xf32>
    %c0_8 = arith.constant 0 : index
    %c0_9 = arith.constant 0 : index
    %22 = vector.load %arg4[%c0_8, %c0_9] : memref<1x32xf32, #tpu.memory_space<vmem>>, vector<1x32xf32>
    %23 = vector.broadcast %22 : vector<1x32xf32> to vector<16x32xf32>
    %24 = arith.addf %21, %23 : vector<16x32xf32>
    %c0_10 = arith.constant 0 : index
    %c0_11 = arith.constant 0 : index
    %25 = vector.load %arg5[%c0_10, %c0_11] : memref<32x32xf32, #tpu.memory_space<vmem>>, vector<32x32xf32>
    %cst_12 = arith.constant dense<0.000000e+00> : vector<16x32xf32>
    %26 = tpu.matmul %24, %25, %cst_12 {dimension_numbers = #tpu.dot_dimension_numbers<[1], [0], [0], [1], [0, 0, 1, 1], [], []>} : vector<16x32xf32>, vector<32x32xf32>, vector<16x32xf32> -> vector<16x32xf32>
    %c0_13 = arith.constant 0 : index
    %c0_14 = arith.constant 0 : index
    %27 = vector.load %arg6[%c0_13, %c0_14] : memref<1x32xf32, #tpu.memory_space<vmem>>, vector<1x32xf32>
    %28 = vector.broadcast %27 : vector<1x32xf32> to vector<16x32xf32>
    %29 = arith.addf %26, %28 : vector<16x32xf32>
    %30 = arith.addf %0, %29 : vector<16x32xf32>
    %c0_15 = arith.constant 0 : index
    %c0_16 = arith.constant 0 : index
    %31 = vector.load %arg7[%c0_15, %c0_16] : memref<16x32xf32, #tpu.memory_space<vmem>>, vector<16x32xf32>
    tpu.vector_store %arg7[%c0_15, %c0_16], %30 {strides = array<i32>} : memref<16x32xf32, #tpu.memory_space<vmem>>, vector<16x32xf32>,
    return
  }
  func.func @transform_0(%arg0: i32) -> i32 {
    %c0_i32 = arith.constant 0 : i32
    %c0_i32_0 = arith.constant 0 : i32
    return %c0_i32 : i32
  }
  func.func @transform_1(%arg0: i32) -> (i32, i32) {
    %c0_i32 = arith.constant 0 : i32
    %c0_i32_0 = arith.constant 0 : i32
    return %arg0, %c0_i32 : i32, i32
  }
  func.func @transform_2(%arg0: i32) -> (i32, i32) {
    %c0_i32 = arith.constant 0 : i32
    %c0_i32_0 = arith.constant 0 : i32
    %c0_i32_1 = arith.constant 0 : i32
    return %c0_i32, %c0_i32_0 : i32, i32
  }
  func.func @transform_3(%arg0: i32) -> (i32, i32) {
    %c0_i32 = arith.constant 0 : i32
    %c0_i32_0 = arith.constant 0 : i32
    %c0_i32_1 = arith.constant 0 : i32
    return %c0_i32, %c0_i32_0 : i32, i32
  }
  func.func @transform_4(%arg0: i32) -> (i32, i32) {
    %c0_i32 = arith.constant 0 : i32
    %c0_i32_0 = arith.constant 0 : i32
    %c0_i32_1 = arith.constant 0 : i32
    return %c0_i32, %c0_i32_0 : i32, i32
  }
  func.func @transform_5(%arg0: i32) -> (i32, i32) {
    %c0_i32 = arith.constant 0 : i32
    %c0_i32_0 = arith.constant 0 : i32
    %c0_i32_1 = arith.constant 0 : i32
    return %c0_i32, %c0_i32_0 : i32, i32
  }
  func.func @transform_6(%arg0: i32) -> (i32, i32) {
    %c0_i32 = arith.constant 0 : i32
    %c0_i32_0 = arith.constant 0 : i32
    return %arg0, %c0_i32 : i32, i32
  }
}

</mosaic_0001>

<bundles_post_ra>
// kernel: tpu_custom_call.1
= control target key start
LH: loop header
LB: loop body
LE: loop exit
PB: predicated region body
PF: predicated region fallthrough
CT: control target
= control target key end

     0   :  { %12 = vsyncpa [#allocation4], 0  ;;  %s594_s0 = inlined_call_operand.<no memory space> [shape: s32[1], index: 0, kind: input, shape index: {}]   ;;  %s595_s1 = inlined_call_operand.hbm [shape: f32[16,32], index: 1, kind: input, shape index: {}]   ;;  %s596_s2 = inlined_call_operand.hbm [shape: f32[1,32], index: 2, kind: input, shape index: {}]   ;;  %s597_s3 = inlined_call_operand.hbm [shape: f32[1,32], index: 3, kind: input, shape index: {}]   ;;  %s598_s4 = inlined_call_operand.hbm [shape: f32[32,32], index: 4, kind: input, shape index: {}]   ;;  %s599_s5 = inlined_call_operand.hbm [shape: f32[1,32], index: 5, kind: input, shape index: {}]   ;;  %s600_s6 = inlined_call_operand.hbm [shape: f32[16,32], index: 6, kind: output, shape index: {}]  }
   0x1   :  { %13 = vsyncpa [#allocation7], 0 }
   0x2   :  { %14 = vsyncpa [#allocation10], 0 }
   0x3   :  { %15 = vsyncpa [#allocation5], 0  ;;  %s452_s0 = smov [#allocation6]   ;;  %s312_s24 = scalar_lea.hbm %s596_s2, 16 }
   0x4   :  { %s36_s21 = sshll.u32 %s452_s0, 4  ;;  %p313_p0 = scmp.ne.s32.totalorder %s596_s2, %s312_s24  ;;  %s37_s21 = int_to_ptr.vmem [resolvable:$true] %s36_s21 }
   0x5   :  { %p316_p1 = scmp.lt.u32.totalorder %s312_s24, %s596_s2 }
   0x7   :  { %p318_p2 = pnand %p316_p1, %p313_p0 }
   0x9   :  { %321 = shalt.err (!%p318_p2)
}
   0xa   :  { %s322_s29 = scalar_lea.vmem %s37_s21, 16  ;;  %s326_s30 = scalar_lea.vmem %s37_s21, 32 }
   0xb   :  { %p323_p3 = scmp.ne.s32.totalorder %s37_s21, %s322_s29  ;;  %p327_p4 = scmp.lt.s32.totalorder %s37_s21, %s37_s21 }
   0xc   :  { %p328_p5 = scmp.lt.s32.totalorder %s326_s30, %s322_s29 }
   0xe   :  { %p329_p6 = por %p328_p5, %p327_p4 }
  0x10   :  { %p330_p7 = pnand %p329_p6, %p323_p3 }
  0x12   :  { %333 = shalt.err (!%p330_p7)
}
  0x13   :  { %39 = dma.hbm_to_vmem [thread:$0]  %s596_s2, 16, %s37_s21, [#allocation7]  }
  0x14   :  { %s453_s9 = smov [#allocation9]   ;;  %s454_s11 = smov [#allocation3]  }
  0x15   :  { %s55_s10 = sshll.u32 %s453_s9, 4  ;;  %s23_s12 = sshll.u32 %s454_s11, 4  ;;  %s56_s10 = int_to_ptr.vmem [resolvable:$true] %s55_s10  ;;  %s24_s12 = int_to_ptr.vmem [resolvable:$true] %s23_s12 }
  0x16   :  { %s334_s15 = scalar_lea.hbm %s598_s4, 512 }
  0x17   :  { %p335_p8 = scmp.ne.s32.totalorder %s598_s4, %s334_s15  ;;  %p338_p9 = scmp.lt.u32.totalorder %s334_s15, %s598_s4 }
  0x19   :  { %p340_p10 = pnand %p338_p9, %p335_p8 }
  0x1b   :  { %343 = shalt.err (!%p340_p10)
}
  0x1c   :  { %s344_s2 = scalar_lea.vmem %s56_s10, 512  ;;  %p349_p12 = scmp.lt.s32.totalorder %s56_s10, %s56_s10 }
  0x1d   :  { %p345_p11 = scmp.ne.s32.totalorder %s56_s10, %s344_s2  ;;  %p350_p13 = scmp.lt.s32.totalorder %s344_s2, %s344_s2 }
  0x1f   :  { %p351_p0 = por %p350_p13, %p349_p12 }
  0x21   :  { %p352_p1 = pnand %p351_p0, %p345_p11 }
  0x23   :  { %355 = shalt.err (!%p352_p1)
}
  0x24   :  { %s455_s20 = smov 128   ;;  %s456_s0 = smov 8  }
  0x25   :  { %61 = dma.hbm_to_vmem [thread:$0]  %s598_s4, 512, %s56_s10, [#allocation10], %s455_s20, %s455_s20, %s456_s0  }
  0x26   :  { %s356_s25 = scalar_lea.hbm %s595_s1, 256 }
  0x27   :  { %p357_p2 = scmp.ne.s32.totalorder %s595_s1, %s356_s25  ;;  %p360_p3 = scmp.lt.u32.totalorder %s356_s25, %s595_s1 }
  0x29   :  { %p362_p4 = pnand %p360_p3, %p357_p2 }
  0x2b   :  { %365 = shalt.err (!%p362_p4)
}
  0x2c   :  { %s366_s30 = scalar_lea.vmem %s24_s12, 256  ;;  %p371_p6 = scmp.lt.s32.totalorder %s24_s12, %s24_s12 }
  0x2d   :  { %p367_p5 = scmp.ne.s32.totalorder %s24_s12, %s366_s30  ;;  %p372_p7 = scmp.lt.s32.totalorder %s366_s30, %s366_s30 }
  0x2f   :  { %p373_p8 = por %p372_p7, %p371_p6 }
  0x31   :  { %p374_p9 = pnand %p373_p8, %p367_p5 }
  0x33   :  { %377 = shalt.err (!%p374_p9)
}
  0x34   :  { %29 = dma.hbm_to_vmem [thread:$0]  %s595_s1, 256, %s24_s12, [#allocation4], %s455_s20, %s455_s20, %s456_s0  }
  0x35   :  { %s457_s8 = smov [#allocation8]   ;;  %s458_s10 = smov [#allocation11]  }
  0x36   :  { %s46_s9 = sshll.u32 %s457_s8, 4  ;;  %s68_s11 = sshll.u32 %s458_s10, 4  ;;  %s47_s9 = int_to_ptr.vmem [resolvable:$true] %s46_s9  ;;  %s69_s11 = int_to_ptr.vmem [resolvable:$true] %s68_s11 }
  0x37   :  { %s378_s15 = scalar_lea.hbm %s597_s3, 16 }
  0x38   :  { %p379_p10 = scmp.ne.s32.totalorder %s597_s3, %s378_s15  ;;  %p382_p11 = scmp.lt.u32.totalorder %s378_s15, %s597_s3 }
  0x3a   :  { %p384_p12 = pnand %p382_p11, %p379_p10 }
  0x3c   :  { %387 = shalt.err (!%p384_p12)
}
  0x3d   :  { %s388_s1 = scalar_lea.vmem %s47_s9, 16  ;;  %s392_s12 = scalar_lea.vmem %s47_s9, 32 }
  0x3e   :  { %p389_p13 = scmp.ne.s32.totalorder %s47_s9, %s388_s1  ;;  %p393_p0 = scmp.lt.s32.totalorder %s47_s9, %s47_s9 }
  0x3f   :  { %p394_p1 = scmp.lt.s32.totalorder %s392_s12, %s388_s1 }
  0x41   :  { %p395_p2 = por %p394_p1, %p393_p0 }
  0x43   :  { %p396_p3 = pnand %p395_p2, %p389_p13 }
  0x45   :  { %399 = shalt.err (!%p396_p3)
}
  0x46   :  { %49 = dma.hbm_to_vmem [thread:$0]  %s597_s3, 16, %s47_s9, [#allocation7]  }
  0x47   :  { %s400_s24 = scalar_lea.hbm %s599_s5, 16 }
  0x48   :  { %p401_p4 = scmp.ne.s32.totalorder %s599_s5, %s400_s24  ;;  %p404_p5 = scmp.lt.u32.totalorder %s400_s24, %s599_s5 }
  0x4a   :  { %p406_p6 = pnand %p404_p5, %p401_p4 }
  0x4c   :  { %409 = shalt.err (!%p406_p6)
}
  0x4d   :  { %s410_s29 = scalar_lea.vmem %s69_s11, 16  ;;  %s414_s30 = scalar_lea.vmem %s69_s11, 32 }
  0x4e   :  { %p411_p7 = scmp.ne.s32.totalorder %s69_s11, %s410_s29  ;;  %p415_p8 = scmp.lt.s32.totalorder %s69_s11, %s69_s11 }
  0x4f   :  { %p416_p9 = scmp.lt.s32.totalorder %s414_s30, %s410_s29 }
  0x51   :  { %p417_p10 = por %p416_p9, %p415_p8 }
  0x53   :  { %p418_p11 = pnand %p417_p10, %p411_p7 }
  0x55   :  { %421 = shalt.err (!%p418_p11)
}
  0x56   :  { %71 = dma.hbm_to_vmem [thread:$0]  %s599_s5, 16, %s69_s11, [#allocation10]  }
  0x57   :  { %444 = dma.done.wait [#allocation4], 256  }
  0x58   :  { %445 = vsyncadd [#allocation4], 4294967040 }
  0x59   :  { %446 = dma.done.wait [#allocation7], 32  }
  0x5a   :  { %447 = vsyncadd [#allocation7], 4294967264 }
  0x5b   :  { %448 = dma.done.wait [#allocation10], 528  }
  0x5c   :  { %449 = vsyncadd [#allocation10], 4294966768  ;;  %vm89_vm0 = vcmask 261120   ;;  %v561_v0 = vld [vmem:[#allocation3] sm:$0xff]  ;;  %v563_v1 = vld [vmem:[#allocation3 + $0x8] sm:$0xff]  ;;  %s459_s5 = smov [#allocation12]  }
  0x5d   :  { %v90_v2 = vsel %vm89_vm0, %v561_v0, 0.0  ;;  %v93_v3 = vsel %vm89_vm0, %v563_v1, 0.0  ;;  %v151_v14 = vld [vmem:[#allocation9] sm:$0xff]  ;;  %v152_v15 = vld [vmem:[#allocation9 + $0x8] sm:$0xff]  ;;  %v153_v16 = vld [vmem:[#allocation9 + $0x10] sm:$0xff]  ;;  %s252_s7 = sshll.u32 %s459_s5, 4  ;;  %s253_s7 = int_to_ptr.vmem [resolvable:$true] %s252_s7 }
  0x5e   :  { %91 = vadd.xlane.f32.xlu0 %v90_v2  ;;  %v288_v17 = vpack.c.bf16 %v152_v15, %v151_v14  ;;  %v154_v18 = vld [vmem:[#allocation9 + $0x18] sm:$0xff]  ;;  %v268_v46 = vld [vmem:[#allocation11] ss:$0 sm:$0xff]  ;;  %s422_s8 = scalar_lea.vmem %s253_s7, 256  ;;  %p427_p13 = scmp.lt.s32.totalorder %s253_s7, %s253_s7 }
  0x5f   :  { %v292_v19 = vpack.c.bf16 %v154_v18, %v153_v16  ;;  %v266_v37 = vld [vmem:[#allocation6] ss:$0 sm:$0xff]  ;;  %v267_v39 = vld [vmem:[#allocation8] ss:$0 sm:$0xff]  ;;  %p423_p12 = scmp.ne.s32.totalorder %s253_s7, %s422_s8  ;;  %p428_p0 = scmp.lt.s32.totalorder %s422_s8, %s422_s8 }
  0x60   :  { %289 = vmatprep.subr.bf16.mxu0 %v288_v17 }
  0x61   :  { %291 = vmatpush3.bf16.msra.mxu0 %v288_v17  ;;  %p429_p1 = por %p428_p0, %p427_p13 }
  0x62   :  { %94 = vadd.xlane.f32.xlu0 %v93_v3  ;;  %293 = vmatprep.subr.bf16.mxu0 %v292_v19 }
  0x63   :  { %p430_p2 = pnand %p429_p1, %p423_p12 }
  0x65   :  { %295 = vmatpush3.bf16.msra.mxu0 %v292_v19 }
  0xeb   :  { %v92_v4 = vpop.xlane.xlu0 %91 }
  0xec   :  { %v97_v5 = vmul.f32 0.03125, %v92_v4 }
  0xee   :  { %v99_v6 = vsub.f32 %v561_v0, %v97_v5 }
  0xef   :  { %v95_v7 = vpop.xlane.xlu0 %94 }
  0xf0   :  { %v98_v8 = vmul.f32 0.03125, %v95_v7  ;;  %v101_v9 = vmul.f32 %v99_v6, %v99_v6 }
  0xf2   :  { %v100_v10 = vsub.f32 %v563_v1, %v98_v8  ;;  %v103_v11 = vsel %vm89_vm0, %v101_v9, 0.0 }
  0xf3   :  { %104 = vadd.xlane.f32.xlu1 %v103_v11 }
  0xf4   :  { %v102_v12 = vmul.f32 %v100_v10, %v100_v10 }
  0xf6   :  { %v106_v13 = vsel %vm89_vm0, %v102_v12, 0.0 }
  0xf7   :  { %107 = vadd.xlane.f32.xlu1 %v106_v13 }
 0x180   :  { %v105_v20 = vpop.xlane.xlu1 %104 }
 0x181   :  { %v109_v21 = vmul.f32 0.032258064, %v105_v20 }
 0x183   :  { %304 = vrsqrt.f32 %v109_v21  ;;  %vm113_vm1 = vcmp.eq.f32.partialorder %v109_v21, inf  ;;  %v116_v26 = vand.u32 2147483648, %v109_v21  ;;  %vm115_vm2 = vcmp.eq.f32.partialorder %v109_v21, 0.0 }
 0x184   :  { %v108_v22 = vpop.xlane.xlu1 %107 }
 0x185   :  { %v110_v23 = vmul.f32 0.032258064, %v108_v22 }
 0x187   :  { %306 = vrsqrt.f32 %v110_v23  ;;  %vm120_vm3 = vcmp.eq.f32.partialorder %v110_v23, inf  ;;  %v123_v32 = vand.u32 2147483648, %v110_v23  ;;  %vm122_vm4 = vcmp.eq.f32.partialorder %v110_v23, 0.0 }
 0x18d   :  { %v305_v24 = vpop.eup %304 }
 0x18e   :  { %v112_v25 = vmul.f32 %v305_v24, %v109_v21 }
 0x190   :  { %v114_v27 = vsel %vm113_vm1, %v109_v21, %v112_v25 }
 0x191   :  { %v307_v28 = vpop.eup %306  ;;  %v117_v29 = vsel %vm115_vm2, %v116_v26, %v114_v27 }
 0x192   :  { %v119_v30 = vmul.f32 %v307_v28, %v110_v23  ;;  %v125_v31 = vadd.f32 1e-06, %v117_v29 }
 0x194   :  { %v121_v33 = vsel %vm120_vm3, %v110_v23, %v119_v30  ;;  %308 = vrcp.f32 %v125_v31 }
 0x195   :  { %v124_v34 = vsel %vm122_vm4, %v123_v32, %v121_v33 }
 0x196   :  { %v126_v35 = vadd.f32 1e-06, %v124_v34 }
 0x198   :  { %310 = vrcp.f32 %v126_v35 }
 0x19e   :  { %v309_v36 = vpop.eup %308 }
 0x19f   :  { %v132_v38 = vmul.f32 %v309_v36, %v99_v6 }
 0x1a1   :  { %v140_v40 = vmul.f32 %v266_v37, %v132_v38 }
 0x1a2   :  { %v311_v41 = vpop.eup %310 }
 0x1a3   :  { %v133_v42 = vmul.f32 %v311_v41, %v100_v10  ;;  %v149_v43 = vadd.f32 %v267_v39, %v140_v40 }
 0x1a5   :  { %v141_v44 = vmul.f32 %v266_v37, %v133_v42  ;;  %285 = vmatprep.mubr.msk.f32.mxu0 %vm89_vm0, %v149_v43 }
 0x1a7   :  { %v150_v45 = vadd.f32 %v267_v39, %v141_v44 }
 0x1a9   :  { %286 = vmatmul.mubr.msk.f32.vlgmr.msra.gmra.mrb[0].mxu0 %vm89_vm0, %v150_v45 }
 0x27c   :  { %v287_v47 = vpop.f32.mrb[0].mxu0 }
 0x27d   :  { %v240_v48 = vadd.f32 %v287_v47, %v268_v46  ;;  %v234_v49 = vpop.f32.mrb[1].mxu0 }
 0x27e   :  { %v235_v50 = vadd.f32 %v268_v46, %v234_v49 }
 0x27f   :  { %v244_v51 = vadd.f32 %v240_v48, %v563_v1 }
 0x280   :  { %v243_v52 = vadd.f32 %v235_v50, %v561_v0 }
 0x281   :  { %246 = vst.msk [vmem:[#allocation12 + $0x8] sm:$0xff] %vm89_vm0, %v244_v51 }
 0x282   :  { %245 = vst.msk [vmem:[#allocation12] sm:$0xff] %vm89_vm0, %v243_v52 }
 0x283   :  { %433 = shalt.err (!%p430_p2)
}
 0x284   :  { %s434_s11 = scalar_lea.hbm %s600_s6, 256 }
 0x285   :  { %p435_p3 = scmp.ne.s32.totalorder %s600_s6, %s434_s11  ;;  %p438_p4 = scmp.lt.u32.totalorder %s434_s11, %s600_s6 }
 0x287   :  { %p440_p5 = pnand %p438_p4, %p435_p3 }
 0x289   :  { %443 = shalt.err (!%p440_p5)
}
 0x28a   :  { %258 = dma.vmem_to_hbm [thread:$0]  %s253_s7, 256, %s600_s6, [#allocation5], %s455_s20, %s455_s20, %s456_s0  }
 0x28b   :  { %450 = dma.done.wait [#allocation5], 256  }
 0x28c   :  { %451 = vsyncadd [#allocation5], 4294967040 }
 0x28d   :  { %262 = vsyncpa [#allocation4], 1 }
 0x28e   :  { %263 = vsyncpa [#allocation7], 1 }
 0x28f   :  { %264 = vsyncpa [#allocation10], 1 }
 0x290   :  { %265 = vsyncpa [#allocation5], 1 }

</bundles_post_ra>
